<compile_context>
chip_gen: v7x
topology: tpu7x:2x2x1
jax: 0.10.0
libtpu: 0.0.40
codegen_flags: <defaults>
</compile_context>

<pallas_src>
import jax
import jax.numpy as jnp
from jax import lax
from jax.experimental import pallas as pl
from jax.experimental.pallas import tpu as pltpu

_EPS = 1e-8  # matches torch F.cosine_similarity default eps (per-norm clamp)

# All permutations of (0, 1, 2); order matches itertools.permutations so the
# tie-breaking matches an argmin over permutation costs in that order.
_PERMS = ((0, 1, 2), (0, 2, 1), (1, 0, 2), (1, 2, 0), (2, 0, 1), (2, 1, 0))

_LANES = 128     # vreg lane width (batch lives on lanes)
_SUBLANES = 8    # vreg sublane width
_MAX_SUB = 256   # max sublane-rows per block -> 256*128 = 32768 batch cols/step


def _round_up(x, m):
    return ((x + m - 1) // m) * m


def _cdiv(a, b):
    return (a + b - 1) // b


def _match_kernel(pred_ref, tgt_ref, code_ref):
    """Dense batch-last matcher.

    pred_ref: (9, SUB, 128) f32, row q*3 + d = prediction q, component d
    tgt_ref:  (9, SUB, 128) f32, row t*3 + d = target t, component d
    code_ref: (SUB, 128) i32, packed permutation code in [0, 6)
    """

    def vec(ref, i):
        # components of 3-vector i, each a dense (SUB, 128) slab
        return ref[3 * i], ref[3 * i + 1], ref[3 * i + 2]

    def inv_norm(ref, i):
        a, b, c = vec(ref, i)
        # EUP rsqrt on the clamped squared norm (VPU + EUP only, no MXU/XLU).
        return lax.rsqrt(jnp.maximum(a * a + b * b + c * c, _EPS * _EPS))

    inv_pn = [inv_norm(pred_ref, q) for q in range(3)]
    inv_tn = [inv_norm(tgt_ref, t) for t in range(3)]

    # |cosine similarity| for every (prediction q, target t) pair — nine
    # unrolled 3-term multiply-adds over dense (SUB, 128) slabs.
    sim = [[None] * 3 for _ in range(3)]
    for q in range(3):
        pa, pb, pc = vec(pred_ref, q)
        for t in range(3):
            ta, tb, tc = vec(tgt_ref, t)
            dot = pa * ta + pb * tb + pc * tc
            sim[q][t] = jnp.abs(dot) * (inv_pn[q] * inv_tn[t])

    # Exact Hungarian on the 3x3 cost (cost = 1 - sim): argmin over the six
    # permutations of sum_q cost[q, perm[q]] == argmax of sum_q sim[q, perm[q]].
    # Only the packed permutation code leaves the kernel.
    best = sim[0][0] + sim[1][1] + sim[2][2]          # perm (0, 1, 2)
    code = jnp.zeros(best.shape, jnp.int32)
    for idx in range(1, len(_PERMS)):
        perm = _PERMS[idx]
        score = sim[0][perm[0]] + sim[1][perm[1]] + sim[2][perm[2]]
        upd = score > best                             # strict > keeps earliest perm on ties
        best = jnp.where(upd, score, best)
        code = jnp.where(upd, jnp.int32(idx), code)

    code_ref[...] = code


def hungarian_matcher_stacked(pred_vp1, pred_vp2, pred_vp3, targets, cost_vp=1.0):
    """Stacked-output matcher (preferred entry point for large batches).

    pred_vp{1,2,3}: (bs, 3) predicted vanishing points
    targets:        (bs, T, 3) target vanishing points (T >= 3; only the first
                    3 targets participate, as in the reference C.split(3,-1)[0]).
    Returns: (rows (bs, 3) int32, cols (bs, 3) int32).
    cost_vp is a positive scale on the cost matrix; it does not change argmin.
    """
    del cost_vp
    bs, D = pred_vp1.shape
    assert D == 3, "vanishing points are 3-vectors"
    assert targets.ndim == 3 and targets.shape[0] == bs and targets.shape[2] == 3
    assert targets.shape[1] >= 3

    # Batch-last, lane-dense layout (9, bs): one concatenate + one transpose
    # per input.  TODO(synk): ideally upstream producers hand us (9, B)
    # batch-last tensors directly; the transposes are the remaining HBM traffic.
    pred_l = jnp.concatenate([pred_vp1, pred_vp2, pred_vp3], axis=1).astype(jnp.float32).T
    tgt_l = targets[:, :3, :].astype(jnp.float32).reshape(bs, 9).T

    # Pad only to a multiple of 128 lanes (padded columns are benign constants
    # and are discarded); ragged sublane blocks are handled by Pallas masking.
    bpad = _round_up(bs, _LANES)
    if bpad != bs:
        pad = ((0, 0), (0, bpad - bs))
        pred_l = jnp.pad(pred_l, pad, constant_values=1.0)
        tgt_l = jnp.pad(tgt_l, pad, constant_values=1.0)
    nb = bpad // _LANES

    pred_3d = pred_l.reshape(9, nb, _LANES)   # free, contiguous reshape
    tgt_3d = tgt_l.reshape(9, nb, _LANES)

    if nb <= _SUBLANES:
        sub = nb                  # single block == full dim (allowed by BlockSpec)
    else:
        # >= 2 blocks so both v7x TensorCores get work; each block as large as
        # comfortably fits VMEM (<= 32768 batch columns per step).
        sub = min(_MAX_SUB, _round_up(_cdiv(nb, 2), _SUBLANES))
    grid = _cdiv(nb, sub)         # ragged final block: OOB reads harmless, writes masked

    codes_2d = pl.pallas_call(
        _match_kernel,
        out_shape=jax.ShapeDtypeStruct((nb, _LANES), jnp.int32),
        grid_spec=pltpu.PrefetchScalarGridSpec(
            num_scalar_prefetch=0,
            grid=(grid,),
            in_specs=[
                pl.BlockSpec((9, sub, _LANES), lambda b: (0, b, 0)),
                pl.BlockSpec((9, sub, _LANES), lambda b: (0, b, 0)),
            ],
            out_specs=pl.BlockSpec((sub, _LANES), lambda b: (b, 0)),
        ),
        compiler_params=pltpu.CompilerParams(dimension_semantics=("parallel",)),
    )(pred_3d, tgt_3d)

    # Decode the packed permutation code (fused by XLA with the slice).
    codes = codes_2d.reshape(bpad)[:bs]                               # (bs,)
    perm_table = jnp.asarray(_PERMS, dtype=jnp.int32)                 # (6, 3)
    cols = perm_table[codes]                                          # (bs, 3)
    rows = jnp.broadcast_to(jnp.arange(3, dtype=jnp.int32), (bs, 3))  # (bs, 3)
    return rows, cols


def hungarian_matcher(pred_vp1, pred_vp2, pred_vp3, targets, cost_vp=1.0):
    """API-compatible wrapper mirroring HungarianMatcher.forward: returns a
    list (length bs) of (row_indices, col_indices) pairs, each int32[3].

    Prefer hungarian_matcher_stacked for large batches: building 2*bs tiny
    per-example device arrays is host-dispatch bound.
    """
    rows, cols = hungarian_matcher_stacked(pred_vp1, pred_vp2, pred_vp3, targets, cost_vp)
    bs = cols.shape[0]
    # TODO(synk): reference returns torch.int64 tensors; int32 returned here
    # (JAX x64 is disabled by default).  Tie-breaking follows the 6-permutation
    # argmin in itertools order, which may differ from scipy on exact ties.
    return [(rows[b], cols[b]) for b in range(bs)]


def _reference_match(pred_vp1, pred_vp2, pred_vp3, targets):
    """Pure-jnp reference: |cosine| matrix + exact 6-permutation assignment."""
    pred = jnp.stack([pred_vp1, pred_vp2, pred_vp3], axis=1).astype(jnp.float32)  # (bs,3,3)
    tgt = targets[:, :3, :].astype(jnp.float32)                                    # (bs,3,3)
    dots = jnp.sum(pred[:, :, None, :] * tgt[:, None, :, :], axis=-1)              # (bs,3,3)
    inv_pn = lax.rsqrt(jnp.maximum(jnp.sum(pred * pred, -1), _EPS * _EPS))         # (bs,3)
    inv_tn = lax.rsqrt(jnp.maximum(jnp.sum(tgt * tgt, -1), _EPS * _EPS))           # (bs,3)
    sim = jnp.abs(dots) * inv_pn[:, :, None] * inv_tn[:, None, :]                  # (bs,3,3)
    perms = jnp.asarray(_PERMS, dtype=jnp.int32)                                   # (6,3)
    gathered = jnp.take_along_axis(
        sim[:, None, :, :], perms[None, :, :, None], axis=-1)[..., 0]              # (bs,6,3)
    best = jnp.argmax(gathered.sum(-1), axis=-1)                                   # (bs,)
    return perms[best]                                                             # (bs,3)


if __name__ == "__main__":
    key = jax.random.PRNGKey(0)

    # Case 1: small batch (matches the module's intended use: 3 VPs, 3-vectors).
    k1, k2, k3, k4 = jax.random.split(key, 4)
    bs, D, T = 2, 3, 3
    pred_vp1 = jax.random.normal(k1, (bs, D), dtype=jnp.float32)
    pred_vp2 = jax.random.normal(k2, (bs, D), dtype=jnp.float32)
    pred_vp3 = jax.random.normal(k3, (bs, D), dtype=jnp.float32)
    targets = jax.random.normal(k4, (bs, T, D), dtype=jnp.float32)

    rows, cols = hungarian_matcher_stacked(pred_vp1, pred_vp2, pred_vp3, targets)
    jax.block_until_ready(cols)
    ref_cols = _reference_match(pred_vp1, pred_vp2, pred_vp3, targets)
    assert bool(jnp.all(cols == ref_cols)), "small-batch assignment mismatch"
    assert bool(jnp.all(rows == jnp.arange(3, dtype=jnp.int32)[None, :]))

    # Case 2: larger batch exercises lane padding, a 2-block grid and a ragged
    # final sublane block, plus T > 3 targets (only the first 3 participate).
    k5, k6, k7, k8 = jax.random.split(jax.random.PRNGKey(1), 4)
    bs2, T2 = 1500, 5
    p1 = jax.random.normal(k5, (bs2, D), dtype=jnp.float32)
    p2 = jax.random.normal(k6, (bs2, D), dtype=jnp.float32)
    p3 = jax.random.normal(k7, (bs2, D), dtype=jnp.float32)
    tg = jax.random.normal(k8, (bs2, T2, D), dtype=jnp.float32)
    _, cols2 = hungarian_matcher_stacked(p1, p2, p3, tg)
    jax.block_until_ready(cols2)
    assert bool(jnp.all(cols2 == _reference_match(p1, p2, p3, tg))), "large-batch mismatch"

    # API-compatible list-of-tuples output (reference forward() signature).
    indices = hungarian_matcher(pred_vp1, pred_vp2, pred_vp3, targets)
    assert len(indices) == bs
    for i, j in indices:
        jax.block_until_ready(i)
        jax.block_until_ready(j)

    print("KERNEL_OK")
</pallas_src>

<mosaic_0001>
module attributes {stable_mosaic.version = 11 : i64} {
  func.func @_match_kernel(%arg0: i32, %arg1: memref<9x1x128xf32, #tpu.memory_space<vmem>>, %arg2: memref<9x1x128xf32, #tpu.memory_space<vmem>>, %arg3: memref<1x128xi32, #tpu.memory_space<vmem>>) attributes {dimension_semantics = [#tpu.dimension_semantics<parallel>], iteration_bounds = array<i64: 1>, scalar_prefetch = 0 : i64, scratch_operands = 0 : i64, tpu.core_type = #tpu.core_type<tc>, window_params = [{transform_indices = @transform_0, window_bounds = array<i64: 9, 1, 128>}, {transform_indices = @transform_1, window_bounds = array<i64: 9, 1, 128>}, {transform_indices = @transform_2, window_bounds = array<i64: 1, 128>}]} {
    %c0 = arith.constant 0 : index
    %c0_0 = arith.constant 0 : index
    %c0_1 = arith.constant 0 : index
    %0 = vector.load %arg1[%c0, %c0_0, %c0_1] : memref<9x1x128xf32, #tpu.memory_space<vmem>>, vector<1x1x128xf32>
    %1 = vector.shape_cast %0 : vector<1x1x128xf32> to vector<1x128xf32>
    %c1 = arith.constant 1 : index
    %c0_2 = arith.constant 0 : index
    %c0_3 = arith.constant 0 : index
    %2 = vector.load %arg1[%c1, %c0_2, %c0_3] : memref<9x1x128xf32, #tpu.memory_space<vmem>>, vector<1x1x128xf32>
    %3 = vector.shape_cast %2 : vector<1x1x128xf32> to vector<1x128xf32>
    %c2 = arith.constant 2 : index
    %c0_4 = arith.constant 0 : index
    %c0_5 = arith.constant 0 : index
    %4 = vector.load %arg1[%c2, %c0_4, %c0_5] : memref<9x1x128xf32, #tpu.memory_space<vmem>>, vector<1x1x128xf32>
    %5 = vector.shape_cast %4 : vector<1x1x128xf32> to vector<1x128xf32>
    %6 = arith.mulf %1, %1 : vector<1x128xf32>
    %7 = arith.mulf %3, %3 : vector<1x128xf32>
    %8 = arith.addf %6, %7 : vector<1x128xf32>
    %9 = arith.mulf %5, %5 : vector<1x128xf32>
    %10 = arith.addf %8, %9 : vector<1x128xf32>
    %cst = arith.constant 1.000000e-16 : f32
    %11 = vector.broadcast %cst : f32 to vector<1x128xf32>
    %12 = arith.maximumf %10, %11 : vector<1x128xf32>
    %13 = math.rsqrt %12 : vector<1x128xf32>
    %c3 = arith.constant 3 : index
    %c0_6 = arith.constant 0 : index
    %c0_7 = arith.constant 0 : index
    %14 = vector.load %arg1[%c3, %c0_6, %c0_7] : memref<9x1x128xf32, #tpu.memory_space<vmem>>, vector<1x1x128xf32>
    %15 = vector.shape_cast %14 : vector<1x1x128xf32> to vector<1x128xf32>
    %c4 = arith.constant 4 : index
    %c0_8 = arith.constant 0 : index
    %c0_9 = arith.constant 0 : index
    %16 = vector.load %arg1[%c4, %c0_8, %c0_9] : memref<9x1x128xf32, #tpu.memory_space<vmem>>, vector<1x1x128xf32>
    %17 = vector.shape_cast %16 : vector<1x1x128xf32> to vector<1x128xf32>
    %c5 = arith.constant 5 : index
    %c0_10 = arith.constant 0 : index
    %c0_11 = arith.constant 0 : index
    %18 = vector.load %arg1[%c5, %c0_10, %c0_11] : memref<9x1x128xf32, #tpu.memory_space<vmem>>, vector<1x1x128xf32>
    %19 = vector.shape_cast %18 : vector<1x1x128xf32> to vector<1x128xf32>
    %20 = arith.mulf %15, %15 : vector<1x128xf32>
    %21 = arith.mulf %17, %17 : vector<1x128xf32>
    %22 = arith.addf %20, %21 : vector<1x128xf32>
    %23 = arith.mulf %19, %19 : vector<1x128xf32>
    %24 = arith.addf %22, %23 : vector<1x128xf32>
    %cst_12 = arith.constant 1.000000e-16 : f32
    %25 = vector.broadcast %cst_12 : f32 to vector<1x128xf32>
    %26 = arith.maximumf %24, %25 : vector<1x128xf32>
    %27 = math.rsqrt %26 : vector<1x128xf32>
    %c6 = arith.constant 6 : index
    %c0_13 = arith.constant 0 : index
    %c0_14 = arith.constant 0 : index
    %28 = vector.load %arg1[%c6, %c0_13, %c0_14] : memref<9x1x128xf32, #tpu.memory_space<vmem>>, vector<1x1x128xf32>
    %29 = vector.shape_cast %28 : vector<1x1x128xf32> to vector<1x128xf32>
    %c7 = arith.constant 7 : index
    %c0_15 = arith.constant 0 : index
    %c0_16 = arith.constant 0 : index
    %30 = vector.load %arg1[%c7, %c0_15, %c0_16] : memref<9x1x128xf32, #tpu.memory_space<vmem>>, vector<1x1x128xf32>
    %31 = vector.shape_cast %30 : vector<1x1x128xf32> to vector<1x128xf32>
    %c8 = arith.constant 8 : index
    %c0_17 = arith.constant 0 : index
    %c0_18 = arith.constant 0 : index
    %32 = vector.load %arg1[%c8, %c0_17, %c0_18] : memref<9x1x128xf32, #tpu.memory_space<vmem>>, vector<1x1x128xf32>
    %33 = vector.shape_cast %32 : vector<1x1x128xf32> to vector<1x128xf32>
    %34 = arith.mulf %29, %29 : vector<1x128xf32>
    %35 = arith.mulf %31, %31 : vector<1x128xf32>
    %36 = arith.addf %34, %35 : vector<1x128xf32>
    %37 = arith.mulf %33, %33 : vector<1x128xf32>
    %38 = arith.addf %36, %37 : vector<1x128xf32>
    %cst_19 = arith.constant 1.000000e-16 : f32
    %39 = vector.broadcast %cst_19 : f32 to vector<1x128xf32>
    %40 = arith.maximumf %38, %39 : vector<1x128xf32>
    %41 = math.rsqrt %40 : vector<1x128xf32>
    %c0_20 = arith.constant 0 : index
    %c0_21 = arith.constant 0 : index
    %c0_22 = arith.constant 0 : index
    %42 = vector.load %arg2[%c0_20, %c0_21, %c0_22] : memref<9x1x128xf32, #tpu.memory_space<vmem>>, vector<1x1x128xf32>
    %43 = vector.shape_cast %42 : vector<1x1x128xf32> to vector<1x128xf32>
    %c1_23 = arith.constant 1 : index
    %c0_24 = arith.constant 0 : index
    %c0_25 = arith.constant 0 : index
    %44 = vector.load %arg2[%c1_23, %c0_24, %c0_25] : memref<9x1x128xf32, #tpu.memory_space<vmem>>, vector<1x1x128xf32>
    %45 = vector.shape_cast %44 : vector<1x1x128xf32> to vector<1x128xf32>
    %c2_26 = arith.constant 2 : index
    %c0_27 = arith.constant 0 : index
    %c0_28 = arith.constant 0 : index
    %46 = vector.load %arg2[%c2_26, %c0_27, %c0_28] : memref<9x1x128xf32, #tpu.memory_space<vmem>>, vector<1x1x128xf32>
    %47 = vector.shape_cast %46 : vector<1x1x128xf32> to vector<1x128xf32>
    %48 = arith.mulf %43, %43 : vector<1x128xf32>
    %49 = arith.mulf %45, %45 : vector<1x128xf32>
    %50 = arith.addf %48, %49 : vector<1x128xf32>
    %51 = arith.mulf %47, %47 : vector<1x128xf32>
    %52 = arith.addf %50, %51 : vector<1x128xf32>
    %cst_29 = arith.constant 1.000000e-16 : f32
    %53 = vector.broadcast %cst_29 : f32 to vector<1x128xf32>
    %54 = arith.maximumf %52, %53 : vector<1x128xf32>
    %55 = math.rsqrt %54 : vector<1x128xf32>
    %c3_30 = arith.constant 3 : index
    %c0_31 = arith.constant 0 : index
    %c0_32 = arith.constant 0 : index
    %56 = vector.load %arg2[%c3_30, %c0_31, %c0_32] : memref<9x1x128xf32, #tpu.memory_space<vmem>>, vector<1x1x128xf32>
    %57 = vector.shape_cast %56 : vector<1x1x128xf32> to vector<1x128xf32>
    %c4_33 = arith.constant 4 : index
    %c0_34 = arith.constant 0 : index
    %c0_35 = arith.constant 0 : index
    %58 = vector.load %arg2[%c4_33, %c0_34, %c0_35] : memref<9x1x128xf32, #tpu.memory_space<vmem>>, vector<1x1x128xf32>
    %59 = vector.shape_cast %58 : vector<1x1x128xf32> to vector<1x128xf32>
    %c5_36 = arith.constant 5 : index
    %c0_37 = arith.constant 0 : index
    %c0_38 = arith.constant 0 : index
    %60 = vector.load %arg2[%c5_36, %c0_37, %c0_38] : memref<9x1x128xf32, #tpu.memory_space<vmem>>, vector<1x1x128xf32>
    %61 = vector.shape_cast %60 : vector<1x1x128xf32> to vector<1x128xf32>
    %62 = arith.mulf %57, %57 : vector<1x128xf32>
    %63 = arith.mulf %59, %59 : vector<1x128xf32>
    %64 = arith.addf %62, %63 : vector<1x128xf32>
    %65 = arith.mulf %61, %61 : vector<1x128xf32>
    %66 = arith.addf %64, %65 : vector<1x128xf32>
    %cst_39 = arith.constant 1.000000e-16 : f32
    %67 = vector.broadcast %cst_39 : f32 to vector<1x128xf32>
    %68 = arith.maximumf %66, %67 : vector<1x128xf32>
    %69 = math.rsqrt %68 : vector<1x128xf32>
    %c6_40 = arith.constant 6 : index
    %c0_41 = arith.constant 0 : index
    %c0_42 = arith.constant 0 : index
    %70 = vector.load %arg2[%c6_40, %c0_41, %c0_42] : memref<9x1x128xf32, #tpu.memory_space<vmem>>, vector<1x1x128xf32>
    %71 = vector.shape_cast %70 : vector<1x1x128xf32> to vector<1x128xf32>
    %c7_43 = arith.constant 7 : index
    %c0_44 = arith.constant 0 : index
    %c0_45 = arith.constant 0 : index
    %72 = vector.load %arg2[%c7_43, %c0_44, %c0_45] : memref<9x1x128xf32, #tpu.memory_space<vmem>>, vector<1x1x128xf32>
    %73 = vector.shape_cast %72 : vector<1x1x128xf32> to vector<1x128xf32>
    %c8_46 = arith.constant 8 : index
    %c0_47 = arith.constant 0 : index
    %c0_48 = arith.constant 0 : index
    %74 = vector.load %arg2[%c8_46, %c0_47, %c0_48] : memref<9x1x128xf32, #tpu.memory_space<vmem>>, vector<1x1x128xf32>
    %75 = vector.shape_cast %74 : vector<1x1x128xf32> to vector<1x128xf32>
    %76 = arith.mulf %71, %71 : vector<1x128xf32>
    %77 = arith.mulf %73, %73 : vector<1x128xf32>
    %78 = arith.addf %76, %77 : vector<1x128xf32>
    %79 = arith.mulf %75, %75 : vector<1x128xf32>
    %80 = arith.addf %78, %79 : vector<1x128xf32>
    %cst_49 = arith.constant 1.000000e-16 : f32
    %81 = vector.broadcast %cst_49 : f32 to vector<1x128xf32>
    %82 = arith.maximumf %80, %81 : vector<1x128xf32>
    %83 = math.rsqrt %82 : vector<1x128xf32>
    %c0_50 = arith.constant 0 : index
    %c0_51 = arith.constant 0 : index
    %c0_52 = arith.constant 0 : index
    %84 = vector.load %arg1[%c0_50, %c0_51, %c0_52] : memref<9x1x128xf32, #tpu.memory_space<vmem>>, vector<1x1x128xf32>
    %85 = vector.shape_cast %84 : vector<1x1x128xf32> to vector<1x128xf32>
    %c1_53 = arith.constant 1 : index
    %c0_54 = arith.constant 0 : index
    %c0_55 = arith.constant 0 : index
    %86 = vector.load %arg1[%c1_53, %c0_54, %c0_55] : memref<9x1x128xf32, #tpu.memory_space<vmem>>, vector<1x1x128xf32>
    %87 = vector.shape_cast %86 : vector<1x1x128xf32> to vector<1x128xf32>
    %c2_56 = arith.constant 2 : index
    %c0_57 = arith.constant 0 : index
    %c0_58 = arith.constant 0 : index
    %88 = vector.load %arg1[%c2_56, %c0_57, %c0_58] : memref<9x1x128xf32, #tpu.memory_space<vmem>>, vector<1x1x128xf32>
    %89 = vector.shape_cast %88 : vector<1x1x128xf32> to vector<1x128xf32>
    %c0_59 = arith.constant 0 : index
    %c0_60 = arith.constant 0 : index
    %c0_61 = arith.constant 0 : index
    %90 = vector.load %arg2[%c0_59, %c0_60, %c0_61] : memref<9x1x128xf32, #tpu.memory_space<vmem>>, vector<1x1x128xf32>
    %91 = vector.shape_cast %90 : vector<1x1x128xf32> to vector<1x128xf32>
    %c1_62 = arith.constant 1 : index
    %c0_63 = arith.constant 0 : index
    %c0_64 = arith.constant 0 : index
    %92 = vector.load %arg2[%c1_62, %c0_63, %c0_64] : memref<9x1x128xf32, #tpu.memory_space<vmem>>, vector<1x1x128xf32>
    %93 = vector.shape_cast %92 : vector<1x1x128xf32> to vector<1x128xf32>
    %c2_65 = arith.constant 2 : index
    %c0_66 = arith.constant 0 : index
    %c0_67 = arith.constant 0 : index
    %94 = vector.load %arg2[%c2_65, %c0_66, %c0_67] : memref<9x1x128xf32, #tpu.memory_space<vmem>>, vector<1x1x128xf32>
    %95 = vector.shape_cast %94 : vector<1x1x128xf32> to vector<1x128xf32>
    %96 = arith.mulf %85, %91 : vector<1x128xf32>
    %97 = arith.mulf %87, %93 : vector<1x128xf32>
    %98 = arith.addf %96, %97 : vector<1x128xf32>
    %99 = arith.mulf %89, %95 : vector<1x128xf32>
    %100 = arith.addf %98, %99 : vector<1x128xf32>
    %101 = math.absf %100 : vector<1x128xf32>
    %102 = arith.mulf %13, %55 : vector<1x128xf32>
    %103 = arith.mulf %101, %102 : vector<1x128xf32>
    %c3_68 = arith.constant 3 : index
    %c0_69 = arith.constant 0 : index
    %c0_70 = arith.constant 0 : index
    %104 = vector.load %arg2[%c3_68, %c0_69, %c0_70] : memref<9x1x128xf32, #tpu.memory_space<vmem>>, vector<1x1x128xf32>
    %105 = vector.shape_cast %104 : vector<1x1x128xf32> to vector<1x128xf32>
    %c4_71 = arith.constant 4 : index
    %c0_72 = arith.constant 0 : index
    %c0_73 = arith.constant 0 : index
    %106 = vector.load %arg2[%c4_71, %c0_72, %c0_73] : memref<9x1x128xf32, #tpu.memory_space<vmem>>, vector<1x1x128xf32>
    %107 = vector.shape_cast %106 : vector<1x1x128xf32> to vector<1x128xf32>
    %c5_74 = arith.constant 5 : index
    %c0_75 = arith.constant 0 : index
    %c0_76 = arith.constant 0 : index
    %108 = vector.load %arg2[%c5_74, %c0_75, %c0_76] : memref<9x1x128xf32, #tpu.memory_space<vmem>>, vector<1x1x128xf32>
    %109 = vector.shape_cast %108 : vector<1x1x128xf32> to vector<1x128xf32>
    %110 = arith.mulf %85, %105 : vector<1x128xf32>
    %111 = arith.mulf %87, %107 : vector<1x128xf32>
    %112 = arith.addf %110, %111 : vector<1x128xf32>
    %113 = arith.mulf %89, %109 : vector<1x128xf32>
    %114 = arith.addf %112, %113 : vector<1x128xf32>
    %115 = math.absf %114 : vector<1x128xf32>
    %116 = arith.mulf %13, %69 : vector<1x128xf32>
    %117 = arith.mulf %115, %116 : vector<1x128xf32>
    %c6_77 = arith.constant 6 : index
    %c0_78 = arith.constant 0 : index
    %c0_79 = arith.constant 0 : index
    %118 = vector.load %arg2[%c6_77, %c0_78, %c0_79] : memref<9x1x128xf32, #tpu.memory_space<vmem>>, vector<1x1x128xf32>
    %119 = vector.shape_cast %118 : vector<1x1x128xf32> to vector<1x128xf32>
    %c7_80 = arith.constant 7 : index
    %c0_81 = arith.constant 0 : index
    %c0_82 = arith.constant 0 : index
    %120 = vector.load %arg2[%c7_80, %c0_81, %c0_82] : memref<9x1x128xf32, #tpu.memory_space<vmem>>, vector<1x1x128xf32>
    %121 = vector.shape_cast %120 : vector<1x1x128xf32> to vector<1x128xf32>
    %c8_83 = arith.constant 8 : index
    %c0_84 = arith.constant 0 : index
    %c0_85 = arith.constant 0 : index
    %122 = vector.load %arg2[%c8_83, %c0_84, %c0_85] : memref<9x1x128xf32, #tpu.memory_space<vmem>>, vector<1x1x128xf32>
    %123 = vector.shape_cast %122 : vector<1x1x128xf32> to vector<1x128xf32>
    %124 = arith.mulf %85, %119 : vector<1x128xf32>
    %125 = arith.mulf %87, %121 : vector<1x128xf32>
    %126 = arith.addf %124, %125 : vector<1x128xf32>
    %127 = arith.mulf %89, %123 : vector<1x128xf32>
    %128 = arith.addf %126, %127 : vector<1x128xf32>
    %129 = math.absf %128 : vector<1x128xf32>
    %130 = arith.mulf %13, %83 : vector<1x128xf32>
    %131 = arith.mulf %129, %130 : vector<1x128xf32>
    %c3_86 = arith.constant 3 : index
    %c0_87 = arith.constant 0 : index
    %c0_88 = arith.constant 0 : index
    %132 = vector.load %arg1[%c3_86, %c0_87, %c0_88] : memref<9x1x128xf32, #tpu.memory_space<vmem>>, vector<1x1x128xf32>
    %133 = vector.shape_cast %132 : vector<1x1x128xf32> to vector<1x128xf32>
    %c4_89 = arith.constant 4 : index
    %c0_90 = arith.constant 0 : index
    %c0_91 = arith.constant 0 : index
    %134 = vector.load %arg1[%c4_89, %c0_90, %c0_91] : memref<9x1x128xf32, #tpu.memory_space<vmem>>, vector<1x1x128xf32>
    %135 = vector.shape_cast %134 : vector<1x1x128xf32> to vector<1x128xf32>
    %c5_92 = arith.constant 5 : index
    %c0_93 = arith.constant 0 : index
    %c0_94 = arith.constant 0 : index
    %136 = vector.load %arg1[%c5_92, %c0_93, %c0_94] : memref<9x1x128xf32, #tpu.memory_space<vmem>>, vector<1x1x128xf32>
    %137 = vector.shape_cast %136 : vector<1x1x128xf32> to vector<1x128xf32>
    %c0_95 = arith.constant 0 : index
    %c0_96 = arith.constant 0 : index
    %c0_97 = arith.constant 0 : index
    %138 = vector.load %arg2[%c0_95, %c0_96, %c0_97] : memref<9x1x128xf32, #tpu.memory_space<vmem>>, vector<1x1x128xf32>
    %139 = vector.shape_cast %138 : vector<1x1x128xf32> to vector<1x128xf32>
    %c1_98 = arith.constant 1 : index
    %c0_99 = arith.constant 0 : index
    %c0_100 = arith.constant 0 : index
    %140 = vector.load %arg2[%c1_98, %c0_99, %c0_100] : memref<9x1x128xf32, #tpu.memory_space<vmem>>, vector<1x1x128xf32>
    %141 = vector.shape_cast %140 : vector<1x1x128xf32> to vector<1x128xf32>
    %c2_101 = arith.constant 2 : index
    %c0_102 = arith.constant 0 : index
    %c0_103 = arith.constant 0 : index
    %142 = vector.load %arg2[%c2_101, %c0_102, %c0_103] : memref<9x1x128xf32, #tpu.memory_space<vmem>>, vector<1x1x128xf32>
    %143 = vector.shape_cast %142 : vector<1x1x128xf32> to vector<1x128xf32>
    %144 = arith.mulf %133, %139 : vector<1x128xf32>
    %145 = arith.mulf %135, %141 : vector<1x128xf32>
    %146 = arith.addf %144, %145 : vector<1x128xf32>
    %147 = arith.mulf %137, %143 : vector<1x128xf32>
    %148 = arith.addf %146, %147 : vector<1x128xf32>
    %149 = math.absf %148 : vector<1x128xf32>
    %150 = arith.mulf %27, %55 : vector<1x128xf32>
    %151 = arith.mulf %149, %150 : vector<1x128xf32>
    %c3_104 = arith.constant 3 : index
    %c0_105 = arith.constant 0 : index
    %c0_106 = arith.constant 0 : index
    %152 = vector.load %arg2[%c3_104, %c0_105, %c0_106] : memref<9x1x128xf32, #tpu.memory_space<vmem>>, vector<1x1x128xf32>
    %153 = vector.shape_cast %152 : vector<1x1x128xf32> to vector<1x128xf32>
    %c4_107 = arith.constant 4 : index
    %c0_108 = arith.constant 0 : index
    %c0_109 = arith.constant 0 : index
    %154 = vector.load %arg2[%c4_107, %c0_108, %c0_109] : memref<9x1x128xf32, #tpu.memory_space<vmem>>, vector<1x1x128xf32>
    %155 = vector.shape_cast %154 : vector<1x1x128xf32> to vector<1x128xf32>
    %c5_110 = arith.constant 5 : index
    %c0_111 = arith.constant 0 : index
    %c0_112 = arith.constant 0 : index
    %156 = vector.load %arg2[%c5_110, %c0_111, %c0_112] : memref<9x1x128xf32, #tpu.memory_space<vmem>>, vector<1x1x128xf32>
    %157 = vector.shape_cast %156 : vector<1x1x128xf32> to vector<1x128xf32>
    %158 = arith.mulf %133, %153 : vector<1x128xf32>
    %159 = arith.mulf %135, %155 : vector<1x128xf32>
    %160 = arith.addf %158, %159 : vector<1x128xf32>
    %161 = arith.mulf %137, %157 : vector<1x128xf32>
    %162 = arith.addf %160, %161 : vector<1x128xf32>
    %163 = math.absf %162 : vector<1x128xf32>
    %164 = arith.mulf %27, %69 : vector<1x128xf32>
    %165 = arith.mulf %163, %164 : vector<1x128xf32>
    %c6_113 = arith.constant 6 : index
    %c0_114 = arith.constant 0 : index
    %c0_115 = arith.constant 0 : index
    %166 = vector.load %arg2[%c6_113, %c0_114, %c0_115] : memref<9x1x128xf32, #tpu.memory_space<vmem>>, vector<1x1x128xf32>
    %167 = vector.shape_cast %166 : vector<1x1x128xf32> to vector<1x128xf32>
    %c7_116 = arith.constant 7 : index
    %c0_117 = arith.constant 0 : index
    %c0_118 = arith.constant 0 : index
    %168 = vector.load %arg2[%c7_116, %c0_117, %c0_118] : memref<9x1x128xf32, #tpu.memory_space<vmem>>, vector<1x1x128xf32>
    %169 = vector.shape_cast %168 : vector<1x1x128xf32> to vector<1x128xf32>
    %c8_119 = arith.constant 8 : index
    %c0_120 = arith.constant 0 : index
    %c0_121 = arith.constant 0 : index
    %170 = vector.load %arg2[%c8_119, %c0_120, %c0_121] : memref<9x1x128xf32, #tpu.memory_space<vmem>>, vector<1x1x128xf32>
    %171 = vector.shape_cast %170 : vector<1x1x128xf32> to vector<1x128xf32>
    %172 = arith.mulf %133, %167 : vector<1x128xf32>
    %173 = arith.mulf %135, %169 : vector<1x128xf32>
    %174 = arith.addf %172, %173 : vector<1x128xf32>
    %175 = arith.mulf %137, %171 : vector<1x128xf32>
    %176 = arith.addf %174, %175 : vector<1x128xf32>
    %177 = math.absf %176 : vector<1x128xf32>
    %178 = arith.mulf %27, %83 : vector<1x128xf32>
    %179 = arith.mulf %177, %178 : vector<1x128xf32>
    %c6_122 = arith.constant 6 : index
    %c0_123 = arith.constant 0 : index
    %c0_124 = arith.constant 0 : index
    %180 = vector.load %arg1[%c6_122, %c0_123, %c0_124] : memref<9x1x128xf32, #tpu.memory_space<vmem>>, vector<1x1x128xf32>
    %181 = vector.shape_cast %180 : vector<1x1x128xf32> to vector<1x128xf32>
    %c7_125 = arith.constant 7 : index
    %c0_126 = arith.constant 0 : index
    %c0_127 = arith.constant 0 : index
    %182 = vector.load %arg1[%c7_125, %c0_126, %c0_127] : memref<9x1x128xf32, #tpu.memory_space<vmem>>, vector<1x1x128xf32>
    %183 = vector.shape_cast %182 : vector<1x1x128xf32> to vector<1x128xf32>
    %c8_128 = arith.constant 8 : index
    %c0_129 = arith.constant 0 : index
    %c0_130 = arith.constant 0 : index
    %184 = vector.load %arg1[%c8_128, %c0_129, %c0_130] : memref<9x1x128xf32, #tpu.memory_space<vmem>>, vector<1x1x128xf32>
    %185 = vector.shape_cast %184 : vector<1x1x128xf32> to vector<1x128xf32>
    %c0_131 = arith.constant 0 : index
    %c0_132 = arith.constant 0 : index
    %c0_133 = arith.constant 0 : index
    %186 = vector.load %arg2[%c0_131, %c0_132, %c0_133] : memref<9x1x128xf32, #tpu.memory_space<vmem>>, vector<1x1x128xf32>
    %187 = vector.shape_cast %186 : vector<1x1x128xf32> to vector<1x128xf32>
    %c1_134 = arith.constant 1 : index
    %c0_135 = arith.constant 0 : index
    %c0_136 = arith.constant 0 : index
    %188 = vector.load %arg2[%c1_134, %c0_135, %c0_136] : memref<9x1x128xf32, #tpu.memory_space<vmem>>, vector<1x1x128xf32>
    %189 = vector.shape_cast %188 : vector<1x1x128xf32> to vector<1x128xf32>
    %c2_137 = arith.constant 2 : index
    %c0_138 = arith.constant 0 : index
    %c0_139 = arith.constant 0 : index
    %190 = vector.load %arg2[%c2_137, %c0_138, %c0_139] : memref<9x1x128xf32, #tpu.memory_space<vmem>>, vector<1x1x128xf32>
    %191 = vector.shape_cast %190 : vector<1x1x128xf32> to vector<1x128xf32>
    %192 = arith.mulf %181, %187 : vector<1x128xf32>
    %193 = arith.mulf %183, %189 : vector<1x128xf32>
    %194 = arith.addf %192, %193 : vector<1x128xf32>
    %195 = arith.mulf %185, %191 : vector<1x128xf32>
    %196 = arith.addf %194, %195 : vector<1x128xf32>
    %197 = math.absf %196 : vector<1x128xf32>
    %198 = arith.mulf %41, %55 : vector<1x128xf32>
    %199 = arith.mulf %197, %198 : vector<1x128xf32>
    %c3_140 = arith.constant 3 : index
    %c0_141 = arith.constant 0 : index
    %c0_142 = arith.constant 0 : index
    %200 = vector.load %arg2[%c3_140, %c0_141, %c0_142] : memref<9x1x128xf32, #tpu.memory_space<vmem>>, vector<1x1x128xf32>
    %201 = vector.shape_cast %200 : vector<1x1x128xf32> to vector<1x128xf32>
    %c4_143 = arith.constant 4 : index
    %c0_144 = arith.constant 0 : index
    %c0_145 = arith.constant 0 : index
    %202 = vector.load %arg2[%c4_143, %c0_144, %c0_145] : memref<9x1x128xf32, #tpu.memory_space<vmem>>, vector<1x1x128xf32>
    %203 = vector.shape_cast %202 : vector<1x1x128xf32> to vector<1x128xf32>
    %c5_146 = arith.constant 5 : index
    %c0_147 = arith.constant 0 : index
    %c0_148 = arith.constant 0 : index
    %204 = vector.load %arg2[%c5_146, %c0_147, %c0_148] : memref<9x1x128xf32, #tpu.memory_space<vmem>>, vector<1x1x128xf32>
    %205 = vector.shape_cast %204 : vector<1x1x128xf32> to vector<1x128xf32>
    %206 = arith.mulf %181, %201 : vector<1x128xf32>
    %207 = arith.mulf %183, %203 : vector<1x128xf32>
    %208 = arith.addf %206, %207 : vector<1x128xf32>
    %209 = arith.mulf %185, %205 : vector<1x128xf32>
    %210 = arith.addf %208, %209 : vector<1x128xf32>
    %211 = math.absf %210 : vector<1x128xf32>
    %212 = arith.mulf %41, %69 : vector<1x128xf32>
    %213 = arith.mulf %211, %212 : vector<1x128xf32>
    %c6_149 = arith.constant 6 : index
    %c0_150 = arith.constant 0 : index
    %c0_151 = arith.constant 0 : index
    %214 = vector.load %arg2[%c6_149, %c0_150, %c0_151] : memref<9x1x128xf32, #tpu.memory_space<vmem>>, vector<1x1x128xf32>
    %215 = vector.shape_cast %214 : vector<1x1x128xf32> to vector<1x128xf32>
    %c7_152 = arith.constant 7 : index
    %c0_153 = arith.constant 0 : index
    %c0_154 = arith.constant 0 : index
    %216 = vector.load %arg2[%c7_152, %c0_153, %c0_154] : memref<9x1x128xf32, #tpu.memory_space<vmem>>, vector<1x1x128xf32>
    %217 = vector.shape_cast %216 : vector<1x1x128xf32> to vector<1x128xf32>
    %c8_155 = arith.constant 8 : index
    %c0_156 = arith.constant 0 : index
    %c0_157 = arith.constant 0 : index
    %218 = vector.load %arg2[%c8_155, %c0_156, %c0_157] : memref<9x1x128xf32, #tpu.memory_space<vmem>>, vector<1x1x128xf32>
    %219 = vector.shape_cast %218 : vector<1x1x128xf32> to vector<1x128xf32>
    %220 = arith.mulf %181, %215 : vector<1x128xf32>
    %221 = arith.mulf %183, %217 : vector<1x128xf32>
    %222 = arith.addf %220, %221 : vector<1x128xf32>
    %223 = arith.mulf %185, %219 : vector<1x128xf32>
    %224 = arith.addf %222, %223 : vector<1x128xf32>
    %225 = math.absf %224 : vector<1x128xf32>
    %226 = arith.mulf %41, %83 : vector<1x128xf32>
    %227 = arith.mulf %225, %226 : vector<1x128xf32>
    %228 = arith.addf %103, %165 : vector<1x128xf32>
    %229 = arith.addf %228, %227 : vector<1x128xf32>
    %c0_i32 = arith.constant 0 : i32
    %230 = vector.broadcast %c0_i32 : i32 to vector<1x128xi32>
    %231 = arith.addf %103, %179 : vector<1x128xf32>
    %232 = arith.addf %231, %213 : vector<1x128xf32>
    %233 = arith.cmpf ogt, %232, %229 : vector<1x128xf32>
    %234 = arith.select %233, %232, %229 : vector<1x128xi1>, vector<1x128xf32>
    %c1_i32 = arith.constant 1 : i32
    %235 = vector.broadcast %c1_i32 : i32 to vector<1x128xi32>
    %236 = arith.select %233, %235, %230 : vector<1x128xi1>, vector<1x128xi32>
    %237 = arith.addf %117, %151 : vector<1x128xf32>
    %238 = arith.addf %237, %227 : vector<1x128xf32>
    %239 = arith.cmpf ogt, %238, %234 : vector<1x128xf32>
    %240 = arith.select %239, %238, %234 : vector<1x128xi1>, vector<1x128xf32>
    %c2_i32 = arith.constant 2 : i32
    %241 = vector.broadcast %c2_i32 : i32 to vector<1x128xi32>
    %242 = arith.select %239, %241, %236 : vector<1x128xi1>, vector<1x128xi32>
    %243 = arith.addf %117, %179 : vector<1x128xf32>
    %244 = arith.addf %243, %199 : vector<1x128xf32>
    %245 = arith.cmpf ogt, %244, %240 : vector<1x128xf32>
    %246 = arith.select %245, %244, %240 : vector<1x128xi1>, vector<1x128xf32>
    %c3_i32 = arith.constant 3 : i32
    %247 = vector.broadcast %c3_i32 : i32 to vector<1x128xi32>
    %248 = arith.select %245, %247, %242 : vector<1x128xi1>, vector<1x128xi32>
    %249 = arith.addf %131, %151 : vector<1x128xf32>
    %250 = arith.addf %249, %213 : vector<1x128xf32>
    %251 = arith.cmpf ogt, %250, %246 : vector<1x128xf32>
    %252 = arith.select %251, %250, %246 : vector<1x128xi1>, vector<1x128xf32>
    %c4_i32 = arith.constant 4 : i32
    %253 = vector.broadcast %c4_i32 : i32 to vector<1x128xi32>
    %254 = arith.select %251, %253, %248 : vector<1x128xi1>, vector<1x128xi32>
    %255 = arith.addf %131, %165 : vector<1x128xf32>
    %256 = arith.addf %255, %199 : vector<1x128xf32>
    %257 = arith.cmpf ogt, %256, %252 : vector<1x128xf32>
    %c5_i32 = arith.constant 5 : i32
    %258 = vector.broadcast %c5_i32 : i32 to vector<1x128xi32>
    %259 = arith.select %257, %258, %254 : vector<1x128xi1>, vector<1x128xi32>
    %c0_158 = arith.constant 0 : index
    %c0_159 = arith.constant 0 : index
    %260 = vector.load %arg3[%c0_158, %c0_159] : memref<1x128xi32, #tpu.memory_space<vmem>>, vector<1x128xi32>
    tpu.vector_store %arg3[%c0_158, %c0_159], %259 {strides = array<i32>} : memref<1x128xi32, #tpu.memory_space<vmem>>, vector<1x128xi32>,
    return
  }
  func.func @transform_0(%arg0: i32) -> (i32, i32, i32) {
    %c0_i32 = arith.constant 0 : i32
    %c0_i32_0 = arith.constant 0 : i32
    %c0_i32_1 = arith.constant 0 : i32
    return %c0_i32, %arg0, %c0_i32_0 : i32, i32, i32
  }
  func.func @transform_1(%arg0: i32) -> (i32, i32, i32) {
    %c0_i32 = arith.constant 0 : i32
    %c0_i32_0 = arith.constant 0 : i32
    %c0_i32_1 = arith.constant 0 : i32
    return %c0_i32, %arg0, %c0_i32_0 : i32, i32, i32
  }
  func.func @transform_2(%arg0: i32) -> (i32, i32) {
    %c0_i32 = arith.constant 0 : i32
    %c0_i32_0 = arith.constant 0 : i32
    return %arg0, %c0_i32 : i32, i32
  }
}

</mosaic_0001>

<bundles_post_ra>
// kernel: tpu_custom_call.1
= control target key start
LH: loop header
LB: loop body
LE: loop exit
PB: predicated region body
PF: predicated region fallthrough
CT: control target
= control target key end

     0   :  { %7 = vsyncpa [#allocation3], 0  ;;  %s504_s0 = inlined_call_operand.hbm [shape: f32[9,1,128], index: 0, kind: input, shape index: {}]   ;;  %s505_s1 = inlined_call_operand.hbm [shape: f32[9,1,128], index: 1, kind: input, shape index: {}]   ;;  %s506_s2 = inlined_call_operand.hbm [shape: s32[1,128], index: 2, kind: output, shape index: {}]  }
   0x1   :  { %8 = vsyncpa [#allocation6], 0 }
   0x2   :  { %9 = vsyncpa [#allocation4], 0  ;;  %s321_s9 = smov [#allocation2]   ;;  %s249_s13 = scalar_lea.hbm %s504_s0, 144 }
   0x3   :  { %s15_s10 = sshll.u32 %s321_s9, 4  ;;  %p250_p0 = scmp.ne.s32.totalorder %s504_s0, %s249_s13  ;;  %s16_s10 = int_to_ptr.vmem [resolvable:$true] %s15_s10 }
   0x4   :  { %p253_p1 = scmp.lt.u32.totalorder %s249_s13, %s504_s0 }
   0x6   :  { %p255_p2 = pnand %p253_p1, %p250_p0 }
   0x8   :  { %258 = shalt.err (!%p255_p2)
}
   0x9   :  { %s259_s18 = scalar_lea.vmem %s16_s10, 144  ;;  %s263_s19 = scalar_lea.vmem %s16_s10, 160 }
   0xa   :  { %p260_p3 = scmp.ne.s32.totalorder %s16_s10, %s259_s18  ;;  %p264_p4 = scmp.lt.s32.totalorder %s16_s10, %s16_s10 }
   0xb   :  { %p265_p5 = scmp.lt.s32.totalorder %s263_s19, %s259_s18 }
   0xd   :  { %p266_p6 = por %p265_p5, %p264_p4 }
   0xf   :  { %p267_p7 = pnand %p266_p6, %p260_p3 }
  0x11   :  { %270 = shalt.err (!%p267_p7)
}
  0x12   :  { %s322_s20 = smov 16   ;;  %s323_s21 = smov 1  }
  0x13   :  { %21 = dma.hbm_to_vmem [thread:$0]  %s504_s0, 144, %s16_s10, [#allocation3], %s322_s20, %s322_s20, %s323_s21  }
  0x14   :  { %s324_s24 = smov [#allocation5]   ;;  %s271_s28 = scalar_lea.hbm %s505_s1, 144 }
  0x15   :  { %s27_s25 = sshll.u32 %s324_s24, 4  ;;  %p272_p8 = scmp.ne.s32.totalorder %s505_s1, %s271_s28  ;;  %s28_s25 = int_to_ptr.vmem [resolvable:$true] %s27_s25 }
  0x16   :  { %p275_p9 = scmp.lt.u32.totalorder %s271_s28, %s505_s1 }
  0x18   :  { %p277_p10 = pnand %p275_p9, %p272_p8 }
  0x1a   :  { %280 = shalt.err (!%p277_p10)
}
  0x1b   :  { %s281_s5 = scalar_lea.vmem %s28_s25, 144  ;;  %s285_s0 = scalar_lea.vmem %s28_s25, 160 }
  0x1c   :  { %p282_p11 = scmp.ne.s32.totalorder %s28_s25, %s281_s5  ;;  %p286_p12 = scmp.lt.s32.totalorder %s28_s25, %s28_s25 }
  0x1d   :  { %p287_p13 = scmp.lt.s32.totalorder %s285_s0, %s281_s5 }
  0x1f   :  { %p288_p0 = por %p287_p13, %p286_p12 }
  0x21   :  { %p289_p1 = pnand %p288_p0, %p282_p11 }
  0x23   :  { %292 = shalt.err (!%p289_p1)
}
  0x24   :  { %33 = dma.hbm_to_vmem [thread:$0]  %s505_s1, 144, %s28_s25, [#allocation6], %s322_s20, %s322_s20, %s323_s21  }
  0x25   :  { %315 = dma.done.wait [#allocation3], 144  }
  0x26   :  { %316 = vsyncadd [#allocation3], 4294967152 }
  0x27   :  { %317 = dma.done.wait [#allocation6], 144  }
  0x28   :  { %318 = vsyncadd [#allocation6], 4294967152  ;;  %v366_v0 = vld [vmem:[#allocation2] sm:$0x1]  ;;  %v368_v1 = vld [vmem:[#allocation2 + $0x1] sm:$0x1] }
  0x29   :  { %v370_v2 = vld [vmem:[#allocation2 + $0x2] sm:$0x1]  ;;  %v45_v3 = vmul.f32 %v366_v0, %v366_v0  ;;  %v46_v4 = vmul.f32 %v368_v1, %v368_v1  ;;  %v378_v6 = vld [vmem:[#allocation2 + $0x3] sm:$0x1]  ;;  %v380_v7 = vld [vmem:[#allocation2 + $0x4] sm:$0x1] }
  0x2a   :  { %v48_v5 = vmul.f32 %v370_v2, %v370_v2  ;;  %v382_v8 = vld [vmem:[#allocation2 + $0x5] sm:$0x1]  ;;  %v58_v9 = vmul.f32 %v378_v6, %v378_v6  ;;  %v59_v10 = vmul.f32 %v380_v7, %v380_v7  ;;  %v390_v12 = vld [vmem:[#allocation2 + $0x6] sm:$0x1]  ;;  %v392_v13 = vld [vmem:[#allocation2 + $0x7] sm:$0x1] }
  0x2b   :  { %v61_v11 = vmul.f32 %v382_v8, %v382_v8  ;;  %v394_v14 = vld [vmem:[#allocation2 + $0x8] sm:$0x1]  ;;  %v47_v15 = vadd.f32 %v46_v4, %v45_v3  ;;  %v71_v16 = vmul.f32 %v390_v12, %v390_v12  ;;  %v72_v17 = vmul.f32 %v392_v13, %v392_v13  ;;  %v402_v19 = vld [vmem:[#allocation5] sm:$0x1]  ;;  %v404_v20 = vld [vmem:[#allocation5 + $0x1] sm:$0x1] }
  0x2c   :  { %v74_v18 = vmul.f32 %v394_v14, %v394_v14  ;;  %v406_v21 = vld [vmem:[#allocation5 + $0x2] sm:$0x1]  ;;  %v60_v22 = vadd.f32 %v59_v10, %v58_v9  ;;  %v83_v23 = vmul.f32 %v402_v19, %v402_v19  ;;  %v84_v24 = vmul.f32 %v404_v20, %v404_v20  ;;  %v414_v26 = vld [vmem:[#allocation5 + $0x3] sm:$0x1]  ;;  %v416_v27 = vld [vmem:[#allocation5 + $0x4] sm:$0x1] }
  0x2d   :  { %v86_v25 = vmul.f32 %v406_v21, %v406_v21  ;;  %v418_v28 = vld [vmem:[#allocation5 + $0x5] sm:$0x1]  ;;  %v49_v29 = vadd.f32 %v48_v5, %v47_v15  ;;  %v73_v30 = vadd.f32 %v72_v17, %v71_v16  ;;  %v96_v31 = vmul.f32 %v414_v26, %v414_v26  ;;  %v424_v33 = vld [vmem:[#allocation5 + $0x6] sm:$0x1]  ;;  %v426_v34 = vld [vmem:[#allocation5 + $0x7] sm:$0x1] }
  0x2e   :  { %v97_v32 = vmul.f32 %v416_v27, %v416_v27  ;;  %v428_v35 = vld [vmem:[#allocation5 + $0x8] sm:$0x1]  ;;  %v62_v36 = vadd.f32 %v61_v11, %v60_v22  ;;  %v85_v37 = vadd.f32 %v84_v24, %v83_v23  ;;  %v99_v38 = vmul.f32 %v418_v28, %v418_v28  ;;  %s326_s1 = smov [#allocation7]  }
  0x2f   :  { %v109_v39 = vmul.f32 %v424_v33, %v424_v33  ;;  %v50_v40 = vmax.f32 %v49_v29, 1e-16  ;;  %v75_v41 = vadd.f32 %v74_v18, %v73_v30  ;;  %v110_v43 = vmul.f32 %v426_v34, %v426_v34  ;;  %s221_s8 = sshll.u32 %s326_s1, 4  ;;  %s222_s8 = int_to_ptr.vmem [resolvable:$true] %s221_s8 }
  0x30   :  { %v98_v42 = vadd.f32 %v97_v32, %v96_v31  ;;  %v63_v44 = vmax.f32 %v62_v36, 1e-16  ;;  %v87_v45 = vadd.f32 %v86_v25, %v85_v37  ;;  %v112_v46 = vmul.f32 %v428_v35, %v428_v35  ;;  %s293_s9 = scalar_lea.vmem %s222_s8, 16  ;;  %s297_s10 = scalar_lea.vmem %s222_s8, 32 }
  0x31   :  { %v116_v47 = vmul.f32 %v402_v19, %v366_v0  ;;  %237 = vrsqrt.f32 %v50_v40  ;;  %v76_v48 = vmax.f32 %v75_v41, 1e-16  ;;  %v111_v50 = vadd.f32 %v110_v43, %v109_v39  ;;  %p294_p2 = scmp.ne.s32.totalorder %s222_s8, %s293_s9  ;;  %p298_p3 = scmp.lt.s32.totalorder %s222_s8, %s222_s8 }
  0x32   :  { %v100_v49 = vadd.f32 %v99_v38, %v98_v42  ;;  %239 = vrsqrt.f32 %v63_v44  ;;  %v88_v51 = vmax.f32 %v87_v45, 1e-16  ;;  %v117_v52 = vmul.f32 %v404_v20, %v368_v1  ;;  %p299_p4 = scmp.lt.s32.totalorder %s297_s10, %s293_s9 }
  0x33   :  { %v119_v53 = vmul.f32 %v406_v21, %v370_v2  ;;  %241 = vrsqrt.f32 %v76_v48  ;;  %v113_v55 = vadd.f32 %v112_v46, %v111_v50  ;;  %v124_v56 = vmul.f32 %v414_v26, %v366_v0 }
  0x34   :  { %v101_v54 = vmax.f32 %v100_v49, 1e-16  ;;  %243 = vrsqrt.f32 %v88_v51  ;;  %v118_v57 = vadd.f32 %v117_v52, %v116_v47  ;;  %v125_v58 = vmul.f32 %v416_v27, %v368_v1  ;;  %p300_p5 = por %p299_p4, %p298_p3 }
  0x35   :  { %v114_v59 = vmax.f32 %v113_v55, 1e-16  ;;  %v132_v60 = vmul.f32 %v424_v33, %v366_v0  ;;  %v133_v61 = vmul.f32 %v426_v34, %v368_v1  ;;  %v127_v63 = vmul.f32 %v418_v28, %v370_v2 }
  0x36   :  { %245 = vrsqrt.f32 %v101_v54  ;;  %v126_v62 = vadd.f32 %v125_v58, %v124_v56  ;;  %v140_v3 = vmul.f32 %v402_v19, %v378_v6  ;;  %v120_v4 = vadd.f32 %v119_v53, %v118_v57  ;;  %p301_p6 = pnand %p300_p5, %p294_p2 }
  0x37   :  { %247 = vrsqrt.f32 %v114_v59  ;;  %v141_v5 = vmul.f32 %v404_v20, %v380_v7  ;;  %v143_v9 = vmul.f32 %v406_v21, %v382_v8  ;;  %v134_v10 = vadd.f32 %v133_v61, %v132_v60 }
  0x38   :  { %v135_v0 = vmul.f32 %v428_v35, %v370_v2  ;;  %v148_v1 = vmul.f32 %v414_v26, %v378_v6  ;;  %v149_v11 = vmul.f32 %v416_v27, %v380_v7  ;;  %v151_v16 = vmul.f32 %v418_v28, %v382_v8 }
  0x39   :  { %v142_v15 = vadd.f32 %v141_v5, %v140_v3  ;;  %v156_v17 = vmul.f32 %v424_v33, %v378_v6  ;;  %v128_v18 = vadd.f32 %v127_v63, %v126_v62  ;;  %v157_v23 = vmul.f32 %v426_v34, %v380_v7 }
  0x3a   :  { %v150_v22 = vadd.f32 %v149_v11, %v148_v1  ;;  %v159_v2 = vmul.f32 %v428_v35, %v382_v8  ;;  %v121_v25 = vand.u32 2147483647, %v120_v4  ;;  %v164_v30 = vmul.f32 %v402_v19, %v390_v12 }
  0x3b   :  { %v238_v24 = vpop.eup %237  ;;  %v144_v29 = vadd.f32 %v143_v9, %v142_v15  ;;  %v165_v31 = vmul.f32 %v404_v20, %v392_v13  ;;  %v136_v36 = vadd.f32 %v135_v0, %v134_v10  ;;  %v158_v37 = vadd.f32 %v157_v23, %v156_v17 }
  0x3c   :  { %v240_v32 = vpop.eup %239  ;;  %v152_v6 = vadd.f32 %v151_v16, %v150_v22  ;;  %v172_v38 = vmul.f32 %v414_v26, %v390_v12  ;;  %v167_v8 = vmul.f32 %v406_v21, %v394_v14  ;;  %v173_v41 = vmul.f32 %v416_v27, %v392_v13 }
  0x3d   :  { %v242_v7 = vpop.eup %241  ;;  %v145_v39 = vand.u32 2147483647, %v144_v29  ;;  %v166_v40 = vadd.f32 %v165_v31, %v164_v30  ;;  %v129_v42 = vand.u32 2147483647, %v128_v18  ;;  %v160_v20 = vadd.f32 %v159_v2, %v158_v37 }
  0x3e   :  { %v244_v19 = vpop.eup %243  ;;  %v153_v43 = vand.u32 2147483647, %v152_v6  ;;  %v175_v44 = vmul.f32 %v418_v28, %v394_v14  ;;  %v180_v26 = vmul.f32 %v424_v33, %v390_v12  ;;  %v181_v48 = vmul.f32 %v426_v34, %v392_v13 }
  0x3f   :  { %v122_v46 = vmul.f32 %v244_v19, %v238_v24  ;;  %v146_v47 = vmul.f32 %v244_v19, %v240_v32  ;;  %v161_v50 = vand.u32 2147483647, %v160_v20  ;;  %v174_v27 = vadd.f32 %v173_v41, %v172_v38 }
  0x40   :  { %v246_v45 = vpop.eup %245  ;;  %v137_v53 = vand.u32 2147483647, %v136_v36  ;;  %v168_v55 = vadd.f32 %v167_v8, %v166_v40  ;;  %v182_v61 = vadd.f32 %v181_v48, %v180_v26  ;;  %v183_v12 = vmul.f32 %v428_v35, %v394_v14 }
  0x41   :  { %v130_v21 = vmul.f32 %v246_v45, %v238_v24  ;;  %v154_v49 = vmul.f32 %v246_v45, %v240_v32  ;;  %v248_v51 = vpop.eup %247  ;;  %v123_v52 = vmul.f32 %v122_v46, %v121_v25  ;;  %v147_v54 = vmul.f32 %v146_v47, %v145_v39 }
  0x42   :  { %v138_v28 = vmul.f32 %v248_v51, %v238_v24  ;;  %v162_v57 = vmul.f32 %v248_v51, %v240_v32  ;;  %v178_v58 = vmul.f32 %v246_v45, %v242_v7  ;;  %v176_v60 = vadd.f32 %v175_v44, %v174_v27 }
  0x43   :  { %v131_v56 = vmul.f32 %v130_v21, %v129_v42  ;;  %v155_v59 = vmul.f32 %v154_v49, %v153_v43  ;;  %v170_v33 = vmul.f32 %v244_v19, %v242_v7  ;;  %v169_v34 = vand.u32 2147483647, %v168_v55 }
  0x44   :  { %v163_v13 = vmul.f32 %v162_v57, %v161_v50  ;;  %v177_v62 = vand.u32 2147483647, %v176_v60  ;;  %v184_v63 = vadd.f32 %v183_v12, %v182_v61  ;;  %v186_v3 = vmul.f32 %v248_v51, %v242_v7 }
  0x45   :  { %v139_v4 = vmul.f32 %v138_v28, %v137_v53  ;;  %v188_v0 = vadd.f32 %v155_v59, %v123_v52  ;;  %v195_v1 = vadd.f32 %v147_v54, %v131_v56  ;;  %v171_v11 = vmul.f32 %v170_v33, %v169_v34 }
  0x46   :  { %v190_v5 = vadd.f32 %v163_v13, %v123_v52  ;;  %v179_v9 = vmul.f32 %v178_v58, %v177_v62  ;;  %v185_v10 = vand.u32 2147483647, %v184_v63  ;;  %v200_v17 = vadd.f32 %v163_v13, %v131_v56 }
  0x47   :  { %v205_v23 = vadd.f32 %v147_v54, %v139_v4  ;;  %v210_v35 = vadd.f32 %v155_v59, %v139_v4  ;;  %v325_v24 = vmov 0  }
  0x48   :  { %v187_v15 = vmul.f32 %v186_v3, %v185_v10  ;;  %v191_v16 = vadd.f32 %v190_v5, %v179_v9  ;;  %v201_v14 = vadd.f32 %v200_v17, %v171_v11 }
  0x49   :  { %v206_v29 = vadd.f32 %v205_v23, %v179_v9  ;;  %v211_v32 = vadd.f32 %v210_v35, %v171_v11 }
  0x4a   :  { %v189_v18 = vadd.f32 %v188_v0, %v187_v15  ;;  %v196_v22 = vadd.f32 %v195_v1, %v187_v15 }
  0x4c   :  { %vm192_vm0 = vcmp.gt.f32.partialorder %v191_v16, %v189_v18 }
  0x4d   :  { %v193_v2 = vsel %vm192_vm0, %v191_v16, %v189_v18  ;;  %v194_v25 = vsel %vm192_vm0, 1, %v325_v24 }
  0x4e   :  { %vm197_vm1 = vcmp.gt.f32.partialorder %v196_v22, %v193_v2 }
  0x4f   :  { %v198_v30 = vsel %vm197_vm1, %v196_v22, %v193_v2  ;;  %v199_v31 = vsel %vm197_vm1, 2, %v194_v25 }
  0x50   :  { %vm202_vm2 = vcmp.gt.f32.partialorder %v201_v14, %v198_v30 }
  0x51   :  { %v203_v36 = vsel %vm202_vm2, %v201_v14, %v198_v30  ;;  %v204_v6 = vsel %vm202_vm2, 3, %v199_v31 }
  0x52   :  { %vm207_vm3 = vcmp.gt.f32.partialorder %v206_v29, %v203_v36 }
  0x53   :  { %v208_v37 = vsel %vm207_vm3, %v206_v29, %v203_v36  ;;  %v209_v38 = vsel %vm207_vm3, 4, %v204_v6 }
  0x54   :  { %vm212_vm4 = vcmp.gt.f32.partialorder %v211_v32, %v208_v37 }
  0x55   :  { %v213_v7 = vsel %vm212_vm4, 5, %v209_v38 }
  0x56   :  { %214 = vst [vmem:[#allocation7] sm:$0x1] %v213_v7 }
  0x57   :  { %304 = shalt.err (!%p301_p6)
}
  0x58   :  { %s305_s13 = scalar_lea.hbm %s506_s2, 16 }
  0x59   :  { %p306_p7 = scmp.ne.s32.totalorder %s506_s2, %s305_s13  ;;  %p309_p8 = scmp.lt.u32.totalorder %s305_s13, %s506_s2 }
  0x5b   :  { %p311_p9 = pnand %p309_p8, %p306_p7 }
  0x5d   :  { %314 = shalt.err (!%p311_p9)
}
  0x5e   :  { %224 = dma.vmem_to_hbm [thread:$0]  %s222_s8, 16, %s506_s2, [#allocation4]  }
  0x5f   :  { %319 = dma.done.wait [#allocation4], 16  }
  0x60   :  { %320 = vsyncadd [#allocation4], 4294967280 }
  0x61   :  { %228 = vsyncpa [#allocation3], 1 }
  0x62   :  { %229 = vsyncpa [#allocation6], 1 }
  0x63   :  { %230 = vsyncpa [#allocation4], 1 }

</bundles_post_ra>
